<compile_context>
chip_gen: v7x
topology: tpu7x:2x2x1
jax: 0.10.0
libtpu: 0.0.40
codegen_flags: <defaults>
</compile_context>

<pallas_src>
from functools import partial

import jax
import jax.numpy as jnp
import numpy as np
from jax.experimental import pallas as pl
from jax.experimental.pallas import tpu as pltpu


def _verify_robustness_kernel(labels_ref, b_ref, out_ref):
    """One batch tile per grid step (batch on lanes, classes on sublanes).

    labels_ref : (1, TB)      int32 VMEM  -- true label per sample in the tile
    b_ref      : (2, N, TB)   f32   VMEM  -- [lower; upper] bounds, lane-dense batch
    out_ref    : (2, N-1, TB) f32   VMEM  -- [lower; upper] difference bounds
    """
    lbl = labels_ref[...]                                   # (1, TB) int32
    # Upcast to f32 in-kernel (free here; keeps bound arithmetic sound for bf16 in).
    lo = b_ref[0].astype(jnp.float32)                       # (N, TB)
    hi = b_ref[1].astype(jnp.float32)                       # (N, TB)
    n, tb = lo.shape

    # Extract true-class bounds per sample: iota-vs-labels compare on the sublane
    # (class) axis, then a masked sublane reduce over the N class rows (XLU).
    cls = jax.lax.broadcasted_iota(jnp.int32, (n, tb), 0)   # class index per row
    is_tl = cls == lbl                                      # (N, TB), one True per column
    lo_tl = jnp.sum(jnp.where(is_tl, lo, 0.0), axis=0, keepdims=True)   # (1, TB)
    hi_tl = jnp.sum(jnp.where(is_tl, hi, 0.0), axis=0, keepdims=True)   # (1, TB)

    # Full-length difference bounds for every class j (VPU broadcast subtracts):
    #   lower_j = lower[tl] - upper[j],   upper_j = upper[tl] - lower[j]
    full_lo = lo_tl - hi                                    # (N, TB)
    full_hi = hi_tl - lo                                    # (N, TB)

    # Drop the true-label row: output row j takes original row j if j < tl else j+1.
    # Two static sublane slices + a select; no gather, no dynamic indexing.
    out_cls = jax.lax.broadcasted_iota(jnp.int32, (n - 1, tb), 0)
    keep = out_cls < lbl                                    # (N-1, TB)
    out_lo = jnp.where(keep, full_lo[: n - 1, :], full_lo[1:, :])
    out_hi = jnp.where(keep, full_hi[: n - 1, :], full_hi[1:, :])

    # Two full-slab stores, each (N-1, TB): lane-dense and unmasked (equivalent to a
    # single full-tile store now that the batched layout is in place).
    out_ref[0, :, :] = out_lo.astype(out_ref.dtype)
    out_ref[1, :, :] = out_hi.astype(out_ref.dtype)


@partial(jax.jit, static_argnames=("tile_b",))
def verify_robustness_batch_lane(bounds_lnb: jax.Array, labels: jax.Array,
                                 *, tile_b: int | None = None) -> jax.Array:
    """Batched verification in lane-dense layout (preferred API, no transposes).

    bounds_lnb : (2, N, B) -- bounds_lnb[0] = lower, bounds_lnb[1] = upper
    labels     : (B,) int  -- true label per sample
    returns    : (2, N-1, B) difference bounds (row 0 = lower, row 1 = upper)
    """
    two, n, batch = bounds_lnb.shape
    assert two == 2
    if tile_b is None:
        # Whole batch in one tile when small (no (8,128) divisibility needed for a
        # full-extent block); otherwise large 1024-sample tiles.  Per-tile VMEM is
        # ~160 KiB double-buffered, far under every generation's limit, so no
        # vmem_limit_bytes override is needed at N=10 (revisit if N grows to ~1k).
        tile_b = batch if batch <= 1024 else 1024

    # Guard against out-of-range labels (a bad label would otherwise silently yield
    # zero true-class bounds from the masked reduce).
    labels = jnp.clip(labels.astype(jnp.int32), 0, n - 1)

    pad = (-batch) % tile_b
    if pad:
        bounds_lnb = jnp.pad(bounds_lnb, ((0, 0), (0, 0), (0, pad)))
        labels = jnp.pad(labels, (0, pad))
    bp = batch + pad
    labels2d = labels.reshape(1, bp)

    grid_spec = pl.GridSpec(
        grid=(bp // tile_b,),
        in_specs=[
            pl.BlockSpec((1, tile_b), lambda i: (0, i)),        # labels, lane-aligned
            pl.BlockSpec((2, n, tile_b), lambda i: (0, 0, i)),  # bounds tile
        ],
        out_specs=pl.BlockSpec((2, n - 1, tile_b), lambda i: (0, 0, i)),
    )
    out = pl.pallas_call(
        _verify_robustness_kernel,
        out_shape=jax.ShapeDtypeStruct((2, n - 1, bp), bounds_lnb.dtype),
        grid_spec=grid_spec,
        compiler_params=pltpu.CompilerParams(
            dimension_semantics=("parallel",)),   # shards tiles across v7x's 2 TCs
    )(labels2d, bounds_lnb)

    if pad:
        out = out[:, :, :batch]
    return out


def verify_robustness_batch(bounds_b: jax.Array, labels: jax.Array) -> jax.Array:
    """Compatibility wrapper for (B, N, 2) inputs -> (B, N-1, 2).

    Note: this pays one extra HBM transpose pass on each side; prefer producing /
    consuming the lane-dense (2, N, B) layout and calling verify_robustness_batch_lane.
    """
    b_lane = jnp.transpose(bounds_b, (2, 1, 0))              # (2, N, B)
    out = verify_robustness_batch_lane(b_lane, labels)       # (2, N-1, B)
    return jnp.transpose(out, (2, 1, 0))                     # (B, N-1, 2)


def verify_robustness(bounds: jax.Array, true_label) -> jax.Array:
    """Single sample, matching the PyTorch module: bounds (N, 2) -> (N-1, 2)."""
    b_lane = jnp.transpose(bounds, (1, 0))[:, :, None]       # (2, N, 1)
    labels = jnp.reshape(jnp.asarray(true_label, dtype=jnp.int32), (1,))
    out = verify_robustness_batch_lane(b_lane, labels)       # (2, N-1, 1)
    return jnp.transpose(out[:, :, 0], (1, 0))               # (N-1, 2)


def _reference_numpy(bounds: np.ndarray, true_label: int) -> np.ndarray:
    """Plain-NumPy transcription of the PyTorch forward (steps_backsub == 0)."""
    n = bounds.shape[0]
    w = np.diag(-np.ones(n, dtype=bounds.dtype))
    w[:, true_label] = 1.0
    w = np.concatenate([w[:true_label], w[true_label + 1:]], axis=0)
    bias = np.zeros(n - 1, dtype=bounds.dtype)
    lower = np.clip(w, 0, None) @ bounds[:, 0] + np.clip(w, None, 0) @ bounds[:, 1] + bias
    upper = np.clip(w, 0, None) @ bounds[:, 1] + np.clip(w, None, 0) @ bounds[:, 0] + bias
    return np.stack([lower, upper], axis=1)


if __name__ == "__main__":
    n_classes = 10

    # ---- single-sample path (module semantics) ----
    key = jax.random.PRNGKey(0)
    k1, k2, k3 = jax.random.split(key, 3)
    a = jax.random.normal(k1, (n_classes,), dtype=jnp.float32)
    b = jax.random.normal(k2, (n_classes,), dtype=jnp.float32)
    bounds = jnp.stack([jnp.minimum(a, b), jnp.maximum(a, b)], axis=1)     # (N, 2)
    true_label = 3
    out = jax.block_until_ready(verify_robustness(bounds, true_label))
    ref = _reference_numpy(np.asarray(bounds), true_label)
    assert out.shape == (n_classes - 1, 2)
    assert np.allclose(np.asarray(out), ref, rtol=1e-5, atol=1e-5)

    # ---- batched lane-dense path: B=256 in two 128-sample tiles (exercises grid) ----
    batch = 256
    ka, kb = jax.random.split(k3)
    la = jax.random.normal(ka, (n_classes, batch), dtype=jnp.float32)
    lb = jax.random.normal(kb, (n_classes, batch), dtype=jnp.float32)
    bounds_lnb = jnp.stack([jnp.minimum(la, lb), jnp.maximum(la, lb)], axis=0)  # (2, N, B)
    labels = jax.random.randint(jax.random.PRNGKey(7), (batch,), 0, n_classes,
                                dtype=jnp.int32)
    labels = labels.at[0].set(0).at[1].set(n_classes - 1)   # edge labels included

    out_b = jax.block_until_ready(
        verify_robustness_batch_lane(bounds_lnb, labels, tile_b=128))
    assert out_b.shape == (2, n_classes - 1, batch)

    bnp = np.asarray(bounds_lnb)
    lnp = np.asarray(labels)
    onp = np.asarray(out_b)
    check_idx = sorted(set(list(range(0, batch, 37)) + [0, 1, batch - 1]))
    for i in check_idx:
        bi = np.stack([bnp[0, :, i], bnp[1, :, i]], axis=1)      # (N, 2)
        ref_i = _reference_numpy(bi, int(lnp[i]))                 # (N-1, 2)
        got_i = np.stack([onp[0, :, i], onp[1, :, i]], axis=1)
        assert np.allclose(got_i, ref_i, rtol=1e-5, atol=1e-5)

    # ---- compatibility (B, N, 2) wrapper sanity check on a tiny batch ----
    small_b = jnp.transpose(bounds_lnb[:, :, :4], (2, 1, 0))     # (4, N, 2)
    out_small = jax.block_until_ready(verify_robustness_batch(small_b, labels[:4]))
    for i in range(4):
        ref_i = _reference_numpy(np.asarray(small_b[i]), int(lnp[i]))
        assert np.allclose(np.asarray(out_small[i]), ref_i, rtol=1e-5, atol=1e-5)

    print("KERNEL_OK")
</pallas_src>

<mosaic_0001>
module attributes {stable_mosaic.version = 11 : i64} {
  func.func @_verify_robustness_kernel(%arg0: i32, %arg1: memref<1x1xi32, #tpu.memory_space<vmem>>, %arg2: memref<2x10x1xf32, #tpu.memory_space<vmem>>, %arg3: memref<2x9x1xf32, #tpu.memory_space<vmem>>) attributes {dimension_semantics = [#tpu.dimension_semantics<parallel>], iteration_bounds = array<i64: 1>, scalar_prefetch = 0 : i64, scratch_operands = 0 : i64, tpu.core_type = #tpu.core_type<tc>, window_params = [{transform_indices = @transform_0, window_bounds = array<i64: 1, 1>}, {transform_indices = @transform_1, window_bounds = array<i64: 2, 10, 1>}, {transform_indices = @transform_2, window_bounds = array<i64: 2, 9, 1>}]} {
    %c0 = arith.constant 0 : index
    %c0_0 = arith.constant 0 : index
    %0 = vector.load %arg1[%c0, %c0_0] : memref<1x1xi32, #tpu.memory_space<vmem>>, vector<1x1xi32>
    %c0_1 = arith.constant 0 : index
    %c0_2 = arith.constant 0 : index
    %c0_3 = arith.constant 0 : index
    %1 = vector.load %arg2[%c0_1, %c0_2, %c0_3] : memref<2x10x1xf32, #tpu.memory_space<vmem>>, vector<1x10x1xf32>
    %2 = vector.shape_cast %1 : vector<1x10x1xf32> to vector<10x1xf32>
    %c1 = arith.constant 1 : index
    %c0_4 = arith.constant 0 : index
    %c0_5 = arith.constant 0 : index
    %3 = vector.load %arg2[%c1, %c0_4, %c0_5] : memref<2x10x1xf32, #tpu.memory_space<vmem>>, vector<1x10x1xf32>
    %4 = vector.shape_cast %3 : vector<1x10x1xf32> to vector<10x1xf32>
    %5 = tpu.iota {dimensions = array<i32: 0>} : vector<10x1xi32>
    %6 = vector.broadcast %0 : vector<1x1xi32> to vector<10x1xi32>
    %7 = arith.cmpi eq, %5, %6 : vector<10x1xi32>
    %cst = arith.constant 0.000000e+00 : f32
    %8 = vector.broadcast %cst : f32 to vector<10x1xf32>
    %9 = arith.select %7, %2, %8 : vector<10x1xi1>, vector<10x1xf32>
    %cst_6 = arith.constant dense<0.000000e+00> : vector<1xf32>
    %10 = vector.multi_reduction <add>, %9, %cst_6 [0] : vector<10x1xf32> to vector<1xf32>
    %11 = vector.shape_cast %10 : vector<1xf32> to vector<1x1xf32>
    %cst_7 = arith.constant 0.000000e+00 : f32
    %12 = vector.broadcast %cst_7 : f32 to vector<10x1xf32>
    %13 = arith.select %7, %4, %12 : vector<10x1xi1>, vector<10x1xf32>
    %cst_8 = arith.constant dense<0.000000e+00> : vector<1xf32>
    %14 = vector.multi_reduction <add>, %13, %cst_8 [0] : vector<10x1xf32> to vector<1xf32>
    %15 = vector.shape_cast %14 : vector<1xf32> to vector<1x1xf32>
    %16 = vector.broadcast %11 : vector<1x1xf32> to vector<10x1xf32>
    %17 = arith.subf %16, %4 : vector<10x1xf32>
    %18 = vector.broadcast %15 : vector<1x1xf32> to vector<10x1xf32>
    %19 = arith.subf %18, %2 : vector<10x1xf32>
    %20 = tpu.iota {dimensions = array<i32: 0>} : vector<9x1xi32>
    %21 = vector.broadcast %0 : vector<1x1xi32> to vector<9x1xi32>
    %22 = arith.cmpi slt, %20, %21 : vector<9x1xi32>
    %23 = vector.extract_strided_slice %17 {offsets = [0, 0], sizes = [9, 1], strides = [1, 1]} : vector<10x1xf32> to vector<9x1xf32>
    %24 = vector.extract_strided_slice %17 {offsets = [1, 0], sizes = [9, 1], strides = [1, 1]} : vector<10x1xf32> to vector<9x1xf32>
    %25 = arith.select %22, %23, %24 : vector<9x1xi1>, vector<9x1xf32>
    %26 = vector.extract_strided_slice %19 {offsets = [0, 0], sizes = [9, 1], strides = [1, 1]} : vector<10x1xf32> to vector<9x1xf32>
    %27 = vector.extract_strided_slice %19 {offsets = [1, 0], sizes = [9, 1], strides = [1, 1]} : vector<10x1xf32> to vector<9x1xf32>
    %28 = arith.select %22, %26, %27 : vector<9x1xi1>, vector<9x1xf32>
    %c0_9 = arith.constant 0 : index
    %c0_10 = arith.constant 0 : index
    %c0_11 = arith.constant 0 : index
    %29 = vector.load %arg3[%c0_9, %c0_10, %c0_11] : memref<2x9x1xf32, #tpu.memory_space<vmem>>, vector<1x9x1xf32>
    %30 = vector.shape_cast %29 : vector<1x9x1xf32> to vector<9x1xf32>
    %31 = vector.shape_cast %25 : vector<9x1xf32> to vector<1x9x1xf32>
    tpu.vector_store %arg3[%c0_9, %c0_10, %c0_11], %31 {strides = array<i32>} : memref<2x9x1xf32, #tpu.memory_space<vmem>>, vector<1x9x1xf32>,
    %c1_12 = arith.constant 1 : index
    %c0_13 = arith.constant 0 : index
    %c0_14 = arith.constant 0 : index
    %32 = vector.load %arg3[%c1_12, %c0_13, %c0_14] : memref<2x9x1xf32, #tpu.memory_space<vmem>>, vector<1x9x1xf32>
    %33 = vector.shape_cast %32 : vector<1x9x1xf32> to vector<9x1xf32>
    %34 = vector.shape_cast %28 : vector<9x1xf32> to vector<1x9x1xf32>
    tpu.vector_store %arg3[%c1_12, %c0_13, %c0_14], %34 {strides = array<i32>} : memref<2x9x1xf32, #tpu.memory_space<vmem>>, vector<1x9x1xf32>,
    return
  }
  func.func @transform_0(%arg0: i32) -> (i32, i32) {
    %c0_i32 = arith.constant 0 : i32
    %c0_i32_0 = arith.constant 0 : i32
    return %c0_i32, %arg0 : i32, i32
  }
  func.func @transform_1(%arg0: i32) -> (i32, i32, i32) {
    %c0_i32 = arith.constant 0 : i32
    %c0_i32_0 = arith.constant 0 : i32
    %c0_i32_1 = arith.constant 0 : i32
    return %c0_i32, %c0_i32_0, %arg0 : i32, i32, i32
  }
  func.func @transform_2(%arg0: i32) -> (i32, i32, i32) {
    %c0_i32 = arith.constant 0 : i32
    %c0_i32_0 = arith.constant 0 : i32
    %c0_i32_1 = arith.constant 0 : i32
    return %c0_i32, %c0_i32_0, %arg0 : i32, i32, i32
  }
}

</mosaic_0001>

<bundles_post_ra>
// kernel: verify_robustness_batch_lane.1
= control target key start
LH: loop header
LB: loop body
LE: loop exit
PB: predicated region body
PF: predicated region fallthrough
CT: control target
= control target key end

     0   :  { %v19_v0 = vlaneseq  ;;  %vm30_vm0 = vcmask 7168   ;;  %vm32_vm1 = vcmask 1024   ;;  %vm78_vm4 = vcmask 0   ;;  %s138_s0 = inlined_call_operand.<no memory space> [shape: s32[1,1], index: 0, kind: input, shape index: {}]   ;;  %s139_s1 = inlined_call_operand.vmem [shape: f32[2,10,1], index: 1, kind: input, shape index: {}]   ;;  %s140_s2 = inlined_call_operand.vmem [shape: f32[2,9,1], index: 2, kind: output, shape index: {}]  }
   0x1   :  { %v7_v1 = vstv %s138_s0  ;;  %v14_v4 = vld [vmem:[%s139_s1] sm:$0xff]  ;;  %v15_v5 = vld [vmem:[%s139_s1 + $0x8] sm:$0x3]  ;;  %v87_v6 = vld [vmem:[%s139_s1 + $0x10] sm:$0xff]  ;;  %vm60_vm5 = vcmask 1046528  }
   0x2   :  { %8 = vst [vmem:[#allocation2] sm:$0x1] %v7_v1  ;;  %v20_v2 = vshrl.u32 %v19_v0, 7  ;;  %v88_v7 = vld [vmem:[%s139_s1 + $0x18] sm:$0x3] }
   0x4   :  { %v21_v3 = vadd.s32 8, %v20_v2 }
   0x9   :  { %v89_v8 = vld [vmem:[#allocation2] ss:$0 sm:$0xff] }
   0xa   :  { %vm26_vm2 = vcmp.eq.s32.totalorder %v20_v2, %v89_v8  ;;  %vm27_vm3 = vcmp.eq.s32.totalorder %v21_v3, %v89_v8  ;;  %vm57_vm6 = vcmp.lt.s32.totalorder %v21_v3, %v89_v8  ;;  %vm56_vm7 = vcmp.lt.s32.totalorder %v20_v2, %v89_v8 }
   0xb   :  { %v28_v9 = vsel %vm26_vm2, %v14_v4, 0.0  ;;  %v29_v10 = vsel %vm27_vm3, %v15_v5, 0.0  ;;  %v41_v11 = vsel %vm26_vm2, %v87_v6, 0.0  ;;  %v42_v12 = vsel %vm27_vm3, %v88_v7, 0.0 }
   0xc   :  { %v31_v13 = vsel %vm30_vm0, %v28_v9, 0.0  ;;  %v33_v14 = vsel %vm32_vm1, %v29_v10, 0.0  ;;  %v43_v15 = vsel %vm30_vm0, %v41_v11, 0.0  ;;  %v44_v16 = vsel %vm32_vm1, %v42_v12, 0.0 }
   0xd   :  { %v34_v17 = vadd.f32 %v33_v14, %v31_v13  ;;  %v45_v18 = vadd.f32 %v44_v16, %v43_v15 }
   0xf   :  { %v35_v19 = vrot.slane %v34_v17, 4  ;;  %v46_v20 = vrot.slane %v45_v18, 4 }
  0x11   :  { %v36_v21 = vadd.f32 %v35_v19, %v34_v17  ;;  %v47_v22 = vadd.f32 %v46_v20, %v45_v18 }
  0x13   :  { %v37_v23 = vrot.slane %v36_v21, 2  ;;  %v48_v24 = vrot.slane %v47_v22, 2 }
  0x15   :  { %v38_v25 = vadd.f32 %v37_v23, %v36_v21  ;;  %v49_v26 = vadd.f32 %v48_v24, %v47_v22 }
  0x17   :  { %v39_v27 = vrot.slane %v38_v25, 1  ;;  %v50_v28 = vrot.slane %v49_v26, 1 }
  0x19   :  { %v40_v29 = vadd.f32 %v39_v27, %v38_v25  ;;  %v51_v30 = vadd.f32 %v50_v28, %v49_v26 }
  0x1b   :  { %v53_v31 = vsub.f32 %v40_v29, %v88_v7  ;;  %v55_v32 = vsub.f32 %v51_v30, %v15_v5  ;;  %v52_v33 = vsub.f32 %v40_v29, %v87_v6  ;;  %v54_v34 = vsub.f32 %v51_v30, %v14_v4 }
  0x1d   :  { %v62_v35 = vrot.slane %v53_v31, 1  ;;  %v71_v36 = vrot.slane %v55_v32, 1  ;;  %v61_v37 = vrot.slane %v52_v33, 1  ;;  %v70_v38 = vrot.slane %v54_v34, 1 }
  0x1f   :  { %v67_v39 = vsel %vm57_vm6, %v53_v31, %v62_v35  ;;  %v76_v40 = vsel %vm57_vm6, %v55_v32, %v71_v36  ;;  %v63_v41 = vsel %vm60_vm5, %v61_v37, %v62_v35  ;;  %v72_v42 = vsel %vm60_vm5, %v70_v38, %v71_v36 }
  0x20   :  { %79 = vst.msk [vmem:[%s140_s2 + $0x8] sm:$0x1] %vm78_vm4, %v67_v39  ;;  %91 = vst.msk [vmem:[%s140_s2 + $0x18] sm:$0x1] %vm78_vm4, %v76_v40  ;;  %v66_v43 = vsel %vm56_vm7, %v52_v33, %v63_v41  ;;  %v75_v44 = vsel %vm56_vm7, %v54_v34, %v72_v42 }
  0x21   :  { %77 = vst.msk [vmem:[%s140_s2] sm:$0xff] %vm30_vm0, %v66_v43  ;;  %90 = vst.msk [vmem:[%s140_s2 + $0x10] sm:$0xff] %vm30_vm0, %v75_v44 }

</bundles_post_ra>
